<compile_context>
chip_gen: v7x
topology: tpu7x:2x2x1
jax: 0.10.0
libtpu: 0.0.40
codegen_flags: <defaults>
</compile_context>

<pallas_src>
import jax
import jax.numpy as jnp
from jax.experimental import pallas as pl
from jax.experimental.pallas import tpu as pltpu


def _l2norm_kernel(x_ref, o_ref):
    # Per-row sum of squares (f32 accumulation), then one rsqrt (EUP slot —
    # effectively free) and a single elementwise multiply (VPU).
    x = x_ref[...]
    xf = x.astype(jnp.float32)
    sumsq = jnp.sum(xf * xf, axis=-1, keepdims=True)          # [tile_b, 1]
    # F.normalize: denom = max(||x||_2, 1e-12)  <=>  max(sumsq, 1e-24) pre-rsqrt.
    inv = jax.lax.rsqrt(jnp.maximum(sumsq, jnp.float32(1e-24)))
    # Scale in the input dtype (bf16-native on v6e/v7x; neutral for f32).
    o_ref[...] = (x * inv.astype(x.dtype)).astype(o_ref.dtype)


def _choose_tile_b(B: int, C: int, itemsize: int) -> int:
    """Pick a batch tile: multiple of the sublane quantum, VMEM-budget aware."""
    # sublane packing: f32 -> 8 rows/vreg, bf16/fp16 -> 16, int8/fp8 -> 32
    sub = 8 if itemsize >= 4 else (16 if itemsize == 2 else 32)
    # ~2 MiB per buffer so 2x-double-buffered in+out (4 buffers) plus the f32
    # temporaries fit under the smallest scoped-VMEM default (v5e: 16 MiB),
    # and stay far below v7x's 64 MiB physical VMEM.
    per_buffer_budget = 2 * 1024 * 1024
    row_bytes = max(1, C * itemsize)
    max_rows = (per_buffer_budget // row_bytes) // sub * sub
    tile_b = max(sub, min(max_rows, 1024))   # >=1 sublane group, cap ~1024 rows
    if tile_b >= B:
        return B                              # block == full array: always legal
    return tile_b


def l2norm(x: jax.Array) -> jax.Array:
    """L2-normalize each row of a [B, C] array (exact F.normalize semantics)."""
    assert x.ndim == 2, "the input tensor of L2Norm must be the shape of [B, C]"
    B, C = x.shape
    itemsize = jnp.dtype(x.dtype).itemsize

    # NOTE: for best store throughput callers should keep C a multiple of 128
    # (lane-dense output). Small C (e.g. 32) still works, just with masked
    # partial stores.
    tile_b = _choose_tile_b(B, C, itemsize)
    grid = (pl.cdiv(B, tile_b),)

    # VMEM estimate: in + out double-buffered tiles + ~2 f32 temporaries.
    tile_bytes = tile_b * C * itemsize
    needed = 4 * tile_bytes + 2 * tile_b * C * 4
    vmem_limit = int(min(max(2 * needed, 16 * 1024 * 1024), 60 * 1024 * 1024))
    # TODO(synk): add a K-blocked (grid over C with a sumsq accumulator) path
    # for rows so wide that even a tile_b == sublane-quantum block overflows VMEM.

    return pl.pallas_call(
        _l2norm_kernel,
        out_shape=jax.ShapeDtypeStruct((B, C), x.dtype),
        grid_spec=pltpu.PrefetchScalarGridSpec(
            num_scalar_prefetch=0,
            grid=grid,
            in_specs=[pl.BlockSpec((tile_b, C), lambda i: (i, 0))],
            out_specs=pl.BlockSpec((tile_b, C), lambda i: (i, 0)),
        ),
        compiler_params=pltpu.CompilerParams(
            dimension_semantics=("parallel",),   # batch axis shards across TCs
            vmem_limit_bytes=vmem_limit,
        ),
    )(x)


if __name__ == "__main__":
    key = jax.random.PRNGKey(0)
    B, C = 8, 32
    x = jax.random.normal(key, (B, C), dtype=jnp.float32)

    out = l2norm(x)
    out = jax.block_until_ready(out)

    # Correctness check against plain-JAX reference (divide-based F.normalize).
    ref = x / jnp.maximum(jnp.linalg.norm(x, axis=-1, keepdims=True), 1e-12)
    assert out.shape == (B, C)
    assert jnp.allclose(out, ref, atol=1e-6, rtol=1e-5), (
        f"max abs err = {jnp.max(jnp.abs(out - ref))}"
    )

    print("KERNEL_OK")
</pallas_src>

<mosaic_0001>
module attributes {stable_mosaic.version = 11 : i64} {
  func.func @_l2norm_kernel(%arg0: i32, %arg1: memref<8x32xf32, #tpu.memory_space<vmem>>, %arg2: memref<8x32xf32, #tpu.memory_space<vmem>>) attributes {dimension_semantics = [#tpu.dimension_semantics<parallel>], iteration_bounds = array<i64: 1>, scalar_prefetch = 0 : i64, scratch_operands = 0 : i64, tpu.core_type = #tpu.core_type<tc>, window_params = [{transform_indices = @transform_0, window_bounds = array<i64: 8, 32>}, {transform_indices = @transform_1, window_bounds = array<i64: 8, 32>}]} {
    %c0 = arith.constant 0 : index
    %c0_0 = arith.constant 0 : index
    %0 = vector.load %arg1[%c0, %c0_0] : memref<8x32xf32, #tpu.memory_space<vmem>>, vector<8x32xf32>
    %1 = arith.mulf %0, %0 : vector<8x32xf32>
    %cst = arith.constant dense<0.000000e+00> : vector<8xf32>
    %2 = vector.multi_reduction <add>, %1, %cst [1] : vector<8x32xf32> to vector<8xf32>
    %3 = vector.shape_cast %2 : vector<8xf32> to vector<8x1xf32>
    %cst_1 = arith.constant 1.000000e-24 : f32
    %4 = vector.broadcast %cst_1 : f32 to vector<8x1xf32>
    %5 = arith.maximumf %3, %4 : vector<8x1xf32>
    %6 = math.rsqrt %5 : vector<8x1xf32>
    %7 = vector.broadcast %6 : vector<8x1xf32> to vector<8x32xf32>
    %8 = arith.mulf %0, %7 : vector<8x32xf32>
    %c0_2 = arith.constant 0 : index
    %c0_3 = arith.constant 0 : index
    %9 = vector.load %arg2[%c0_2, %c0_3] : memref<8x32xf32, #tpu.memory_space<vmem>>, vector<8x32xf32>
    tpu.vector_store %arg2[%c0_2, %c0_3], %8 {strides = array<i32>} : memref<8x32xf32, #tpu.memory_space<vmem>>, vector<8x32xf32>,
    return
  }
  func.func @transform_0(%arg0: i32) -> (i32, i32) {
    %c0_i32 = arith.constant 0 : i32
    %c0_i32_0 = arith.constant 0 : i32
    return %arg0, %c0_i32 : i32, i32
  }
  func.func @transform_1(%arg0: i32) -> (i32, i32) {
    %c0_i32 = arith.constant 0 : i32
    %c0_i32_0 = arith.constant 0 : i32
    return %arg0, %c0_i32 : i32, i32
  }
}

</mosaic_0001>

<bundles_post_ra>
// kernel: tpu_custom_call.1
= control target key start
LH: loop header
LB: loop body
LE: loop exit
PB: predicated region body
PF: predicated region fallthrough
CT: control target
= control target key end

     0   :  { %6 = vsyncpa [#allocation3], 0  ;;  %s134_s0 = inlined_call_operand.hbm [shape: f32[8,32], index: 0, kind: input, shape index: {}]   ;;  %s135_s1 = inlined_call_operand.hbm [shape: f32[8,32], index: 1, kind: output, shape index: {}]  }
   0x1   :  { %7 = vsyncpa [#allocation4], 0  ;;  %s98_s6 = smov [#allocation2]   ;;  %s50_s10 = scalar_lea.hbm %s134_s0, 128 }
   0x2   :  { %s14_s7 = sshll.u32 %s98_s6, 4  ;;  %p51_p0 = scmp.ne.s32.totalorder %s134_s0, %s50_s10  ;;  %s15_s7 = int_to_ptr.vmem [resolvable:$true] %s14_s7 }
   0x3   :  { %p54_p1 = scmp.lt.u32.totalorder %s50_s10, %s134_s0 }
   0x5   :  { %p56_p2 = pnand %p54_p1, %p51_p0 }
   0x7   :  { %59 = shalt.err (!%p56_p2)
}
   0x8   :  { %s60_s15 = scalar_lea.vmem %s15_s7, 128  ;;  %p65_p4 = scmp.lt.s32.totalorder %s15_s7, %s15_s7 }
   0x9   :  { %p61_p3 = scmp.ne.s32.totalorder %s15_s7, %s60_s15  ;;  %p66_p5 = scmp.lt.s32.totalorder %s60_s15, %s60_s15 }
   0xb   :  { %p67_p6 = por %p66_p5, %p65_p4 }
   0xd   :  { %p68_p7 = pnand %p67_p6, %p61_p3 }
   0xf   :  { %71 = shalt.err (!%p68_p7)
}
  0x10   :  { %17 = dma.hbm_to_vmem [thread:$0]  %s134_s0, 128, %s15_s7, [#allocation3]  }
  0x11   :  { %94 = dma.done.wait [#allocation3], 128  }
  0x12   :  { %95 = vsyncadd [#allocation3], 4294967168  ;;  %v21_v0 = vld [vmem:[#allocation2] sm:$0xff]  ;;  %vm23_vm0 = vcmask 261120   ;;  %s99_s18 = smov [#allocation5]  }
  0x13   :  { %v22_v1 = vmul.f32 %v21_v0, %v21_v0  ;;  %s37_s19 = sshll.u32 %s99_s18, 4  ;;  %s38_s19 = int_to_ptr.vmem [resolvable:$true] %s37_s19 }
  0x14   :  { %s72_s20 = scalar_lea.vmem %s38_s19, 128  ;;  %p77_p9 = scmp.lt.s32.totalorder %s38_s19, %s38_s19 }
  0x15   :  { %v24_v2 = vsel %vm23_vm0, %v22_v1, 0.0  ;;  %p73_p8 = scmp.ne.s32.totalorder %s38_s19, %s72_s20  ;;  %p78_p10 = scmp.lt.s32.totalorder %s72_s20, %s72_s20 }
  0x16   :  { %25 = vadd.xlane.f32.xlu0 %v24_v2 }
  0x17   :  { %p79_p11 = por %p78_p10, %p77_p9 }
  0x19   :  { %p80_p12 = pnand %p79_p11, %p73_p8 }
  0xa3   :  { %v26_v3 = vpop.xlane.xlu0 %25 }
  0xa4   :  { %v27_v4 = vmax.f32 %v26_v3, 1e-24 }
  0xa6   :  { %48 = vrsqrt.f32 %v27_v4 }
  0xb0   :  { %v49_v5 = vpop.eup %48 }
  0xb1   :  { %v29_v6 = vmul.f32 %v49_v5, %v21_v0 }
  0xb3   :  { %30 = vst.msk [vmem:[#allocation5] sm:$0xff] %vm23_vm0, %v29_v6 }
  0xb4   :  { %83 = shalt.err (!%p80_p12)
}
  0xb5   :  { %s84_s22 = scalar_lea.hbm %s135_s1, 128 }
  0xb6   :  { %p85_p13 = scmp.ne.s32.totalorder %s135_s1, %s84_s22  ;;  %p88_p0 = scmp.lt.u32.totalorder %s84_s22, %s135_s1 }
  0xb8   :  { %p90_p1 = pnand %p88_p0, %p85_p13 }
  0xba   :  { %93 = shalt.err (!%p90_p1)
}
  0xbb   :  { %40 = dma.vmem_to_hbm [thread:$0]  %s38_s19, 128, %s135_s1, [#allocation4]  }
  0xbc   :  { %96 = dma.done.wait [#allocation4], 128  }
  0xbd   :  { %97 = vsyncadd [#allocation4], 4294967168 }
  0xbe   :  { %44 = vsyncpa [#allocation3], 1 }
  0xbf   :  { %45 = vsyncpa [#allocation4], 1 }

</bundles_post_ra>
